<compile_context>
chip_gen: v5e
topology: v5e:2x2
jax: 0.10.0
libtpu: 0.0.40
codegen_flags: <defaults>
</compile_context>

<pallas_src>
from functools import partial

import jax
import jax.numpy as jnp
from jax import lax
from jax.experimental import pallas as pl
from jax.experimental.pallas import tpu as pltpu


def _round_up(n: int, m: int) -> int:
    return ((n + m - 1) // m) * m


def _pick_batch_tile(batch: int, max_tile: int) -> int:
    # Tiny batches: one exact block (block dims == full array dims is always allowed).
    if batch <= 16:
        return batch
    # Otherwise aim for >= 2 grid steps so both v7x TensorCores get work, round the tile to 16
    # sublanes (bf16 output packing), and size it from the step count so the grid does not
    # overshoot batch by almost a full tile (e.g. batch=513 -> 2 tiles of 272, not 2x512).
    n_steps = max(2, pl.cdiv(batch, max_tile))
    return min(max_tile, _round_up(pl.cdiv(batch, n_steps), 16))


def _qnet_bn_kernel(x_ref, w1_ref, s1_ref, t1_ref,
                    w2_ref, s2_ref, t2_ref,
                    w3_ref, b3_ref, out_ref):
    # x_ref: (TB, S) f32 tile of the batch (cast to bf16 here, feeds the MXU);
    # weights bf16; folded BN scale/shift + output bias f32; out_ref bf16.
    x = x_ref[...].astype(w1_ref.dtype)

    # Layer 1: Linear -> BatchNorm(eval) -> ReLU.  MXU matmul, f32 accumulate, f32 VPU epilogue
    # (scale/shift already fold the linear bias + running stats).
    h1 = jnp.dot(x, w1_ref[...], preferred_element_type=jnp.float32)
    h1 = jnp.maximum(h1 * s1_ref[...] + t1_ref[...], 0.0)

    # Layer 2: Linear -> BatchNorm(eval) -> ReLU.
    h2 = jnp.dot(h1.astype(w2_ref.dtype), w2_ref[...],
                 preferred_element_type=jnp.float32)
    h2 = jnp.maximum(h2 * s2_ref[...] + t2_ref[...], 0.0)

    # Layer 3: Linear (output features zero-padded to a lane-dense multiple of 128).
    q = jnp.dot(h2.astype(w3_ref.dtype), w3_ref[...],
                preferred_element_type=jnp.float32)
    out_ref[...] = (q + b3_ref[...]).astype(out_ref.dtype)


def qnetwork_batchnorm_forward(x, params, *, eps=1e-5, max_batch_tile=2048,
                               single_buffer_weights=True):
    """Eval-mode forward of QNetwork_BatchNorm.

    x: (batch, state_dim) float32.
    params: transposed linear weights w1 (S,128), w2 (128,128), w3 (128,A), biases b1/b2/b3,
            and BN params gamma/beta/mean/var for bn1 and bn2 (all shape (128,)).
    Returns (batch, A) float32.
    """
    batch, state_dim = x.shape
    hidden = params["w1"].shape[1]
    action_dim = params["w3"].shape[1]

    # Fold eval-mode BatchNorm (+ the linear bias) into per-feature scale & shift (f32).
    def fold(gamma, beta, mean, var, bias):
        s = gamma * lax.rsqrt(var + eps)
        t = beta + (bias - mean) * s
        return (s.reshape(1, -1).astype(jnp.float32),
                t.reshape(1, -1).astype(jnp.float32))

    s1, t1 = fold(params["gamma1"], params["beta1"], params["mean1"],
                  params["var1"], params["b1"])
    s2, t2 = fold(params["gamma2"], params["beta2"], params["mean2"],
                  params["var2"], params["b2"])

    # Lane-dense output: pad fc3's output features to a multiple of 128 with zeros.
    a_pad = _round_up(action_dim, 128)
    w3p = (jnp.zeros((hidden, a_pad), jnp.float32)
           .at[:, :action_dim].set(params["w3"])).astype(jnp.bfloat16)
    b3p = jnp.zeros((1, a_pad), jnp.float32).at[0, :action_dim].set(params["b3"])

    # bf16 weights into the MXU, f32 accumulation inside the kernel.
    w1 = params["w1"].astype(jnp.bfloat16)
    w2 = params["w2"].astype(jnp.bfloat16)

    tb = _pick_batch_tile(batch, max_batch_tile)
    grid = (pl.cdiv(batch, tb),)

    # Resident operands: constant block index across the grid -> single buffer is enough.
    wmode = pl.Buffered(1) if single_buffer_weights else None
    resident = lambda shape: pl.BlockSpec(shape, lambda *_: (0,) * len(shape),
                                          pipeline_mode=wmode)

    out = pl.pallas_call(
        _qnet_bn_kernel,
        out_shape=jax.ShapeDtypeStruct((batch, a_pad), jnp.bfloat16),
        grid=grid,
        in_specs=[
            pl.BlockSpec((tb, state_dim), lambda i: (i, 0)),   # x streamed over batch (f32)
            resident(w1.shape), resident(s1.shape), resident(t1.shape),
            resident(w2.shape), resident(s2.shape), resident(t2.shape),
            resident(w3p.shape), resident(b3p.shape),
        ],
        out_specs=pl.BlockSpec((tb, a_pad), lambda i: (i, 0)),
        compiler_params=pltpu.CompilerParams(
            dimension_semantics=("parallel",)),
    )(x, w1, s1, t1, w2, s2, t2, w3p, b3p)

    # Drop the padded action columns and return f32 (PyTorch-module semantics).  Under jit this
    # fuses with downstream consumers instead of being a separate full HBM pass.
    return out[:, :action_dim].astype(jnp.float32)


def init_params(key, state_dim, action_dim, hidden=128):
    """Deterministic params mirroring the PyTorch module.  Linear weights are stored
    transposed (in_features, out_features); BN running stats are non-trivial so the
    eval-mode BN path is actually exercised."""
    def linear(k, fan_in, fan_out):
        kw, kb = jax.random.split(k)
        bound = 1.0 / float(jnp.sqrt(fan_in))
        w = jax.random.uniform(kw, (fan_in, fan_out), jnp.float32, -bound, bound)
        b = jax.random.uniform(kb, (fan_out,), jnp.float32, -bound, bound)
        return w, b

    def bn(k, n):
        kg, kb, km, kv = jax.random.split(k, 4)
        gamma = jax.random.uniform(kg, (n,), jnp.float32, 0.5, 1.5)
        beta = 0.1 * jax.random.normal(kb, (n,), jnp.float32)
        mean = 0.1 * jax.random.normal(km, (n,), jnp.float32)
        var = jax.random.uniform(kv, (n,), jnp.float32, 0.5, 1.5)
        return gamma, beta, mean, var

    k1, k2, k3, k4, k5 = jax.random.split(key, 5)
    w1, b1 = linear(k1, state_dim, hidden)
    w2, b2 = linear(k2, hidden, hidden)
    w3, b3 = linear(k3, hidden, action_dim)
    g1, be1, m1, v1 = bn(k4, hidden)
    g2, be2, m2, v2 = bn(k5, hidden)
    return dict(w1=w1, b1=b1, w2=w2, b2=b2, w3=w3, b3=b3,
                gamma1=g1, beta1=be1, mean1=m1, var1=v1,
                gamma2=g2, beta2=be2, mean2=m2, var2=v2)


def reference_forward(x, params, eps=1e-5):
    """Pure-JAX eval-mode reference with the same bf16-matmul / f32-accumulate precision."""
    def bn(h, g, b, m, v):
        return (h - m) * lax.rsqrt(v + eps) * g + b

    xb = x.astype(jnp.bfloat16)
    h1 = jnp.dot(xb, params["w1"].astype(jnp.bfloat16),
                 preferred_element_type=jnp.float32) + params["b1"]
    h1 = jnp.maximum(bn(h1, params["gamma1"], params["beta1"],
                        params["mean1"], params["var1"]), 0.0)
    h2 = jnp.dot(h1.astype(jnp.bfloat16), params["w2"].astype(jnp.bfloat16),
                 preferred_element_type=jnp.float32) + params["b2"]
    h2 = jnp.maximum(bn(h2, params["gamma2"], params["beta2"],
                        params["mean2"], params["var2"]), 0.0)
    return jnp.dot(h2.astype(jnp.bfloat16), params["w3"].astype(jnp.bfloat16),
                   preferred_element_type=jnp.float32) + params["b3"]


if __name__ == "__main__":
    key = jax.random.PRNGKey(0)
    k_param, k_x, k_x2 = jax.random.split(key, 3)

    batch, state_dim, action_dim = 2, 8, 4
    params = init_params(k_param, state_dim, action_dim)
    x = jax.random.normal(k_x, (batch, state_dim), jnp.float32)

    fwd = jax.jit(qnetwork_batchnorm_forward)
    try:
        out = jax.block_until_ready(fwd(x, params))
    except Exception:
        # Fallback if this JAX build rejects pipeline_mode=pl.Buffered(1) on BlockSpec.
        fwd = jax.jit(partial(qnetwork_batchnorm_forward, single_buffer_weights=False))
        out = jax.block_until_ready(fwd(x, params))

    ref = reference_forward(x, params)
    assert out.shape == (batch, action_dim)
    assert jnp.allclose(out, ref, atol=1e-2, rtol=1e-2), (
        f"max abs diff {jnp.max(jnp.abs(out - ref))}")

    # Second small check exercising the multi-step grid + ragged last batch tile.
    batch2 = 50
    x2 = jax.random.normal(k_x2, (batch2, state_dim), jnp.float32)
    out2 = jax.block_until_ready(fwd(x2, params))
    ref2 = reference_forward(x2, params)
    assert out2.shape == (batch2, action_dim)
    assert jnp.allclose(out2, ref2, atol=1e-2, rtol=1e-2), (
        f"max abs diff {jnp.max(jnp.abs(out2 - ref2))}")

    print("KERNEL_OK")
</pallas_src>

<mosaic_0001>
module attributes {stable_mosaic.version = 11 : i64} {
  func.func @_qnet_bn_kernel(%arg0: i32, %arg1: memref<2x8xf32, #tpu.memory_space<vmem>>, %arg2: memref<8x128xbf16, #tpu.memory_space<vmem>>, %arg3: memref<1x128xf32, #tpu.memory_space<vmem>>, %arg4: memref<1x128xf32, #tpu.memory_space<vmem>>, %arg5: memref<128x128xbf16, #tpu.memory_space<vmem>>, %arg6: memref<1x128xf32, #tpu.memory_space<vmem>>, %arg7: memref<1x128xf32, #tpu.memory_space<vmem>>, %arg8: memref<128x128xbf16, #tpu.memory_space<vmem>>, %arg9: memref<1x128xf32, #tpu.memory_space<vmem>>, %arg10: memref<2x128xbf16, #tpu.memory_space<vmem>>) attributes {dimension_semantics = [#tpu.dimension_semantics<parallel>], iteration_bounds = array<i64: 1>, scalar_prefetch = 0 : i64, scratch_operands = 0 : i64, tpu.core_type = #tpu.core_type<tc>, window_params = [{transform_indices = @transform_0, window_bounds = array<i64: 2, 8>}, {pipeline_mode = #tpu.pipeline_mode<synchronous>, transform_indices = @transform_1, window_bounds = array<i64: 8, 128>}, {pipeline_mode = #tpu.pipeline_mode<synchronous>, transform_indices = @transform_2, window_bounds = array<i64: 1, 128>}, {pipeline_mode = #tpu.pipeline_mode<synchronous>, transform_indices = @transform_3, window_bounds = array<i64: 1, 128>}, {pipeline_mode = #tpu.pipeline_mode<synchronous>, transform_indices = @transform_4, window_bounds = array<i64: 128, 128>}, {pipeline_mode = #tpu.pipeline_mode<synchronous>, transform_indices = @transform_5, window_bounds = array<i64: 1, 128>}, {pipeline_mode = #tpu.pipeline_mode<synchronous>, transform_indices = @transform_6, window_bounds = array<i64: 1, 128>}, {pipeline_mode = #tpu.pipeline_mode<synchronous>, transform_indices = @transform_7, window_bounds = array<i64: 128, 128>}, {pipeline_mode = #tpu.pipeline_mode<synchronous>, transform_indices = @transform_8, window_bounds = array<i64: 1, 128>}, {transform_indices = @transform_9, window_bounds = array<i64: 2, 128>}]} {
    %c0 = arith.constant 0 : index
    %c0_0 = arith.constant 0 : index
    %0 = vector.load %arg1[%c0, %c0_0] : memref<2x8xf32, #tpu.memory_space<vmem>>, vector<2x8xf32>
    %1 = arith.truncf %0 : vector<2x8xf32> to vector<2x8xbf16>
    %c0_1 = arith.constant 0 : index
    %c0_2 = arith.constant 0 : index
    %2 = vector.load %arg2[%c0_1, %c0_2] : memref<8x128xbf16, #tpu.memory_space<vmem>>, vector<8x128xbf16>
    %cst = arith.constant dense<0.000000e+00> : vector<2x128xf32>
    %3 = tpu.matmul %1, %2, %cst {dimension_numbers = #tpu.dot_dimension_numbers<[1], [0], [0], [1], [0, 0, 1, 1], [], []>} : vector<2x8xbf16>, vector<8x128xbf16>, vector<2x128xf32> -> vector<2x128xf32>
    %c0_3 = arith.constant 0 : index
    %c0_4 = arith.constant 0 : index
    %4 = vector.load %arg3[%c0_3, %c0_4] : memref<1x128xf32, #tpu.memory_space<vmem>>, vector<1x128xf32>
    %5 = vector.broadcast %4 : vector<1x128xf32> to vector<2x128xf32>
    %6 = arith.mulf %3, %5 : vector<2x128xf32>
    %c0_5 = arith.constant 0 : index
    %c0_6 = arith.constant 0 : index
    %7 = vector.load %arg4[%c0_5, %c0_6] : memref<1x128xf32, #tpu.memory_space<vmem>>, vector<1x128xf32>
    %8 = vector.broadcast %7 : vector<1x128xf32> to vector<2x128xf32>
    %9 = arith.addf %6, %8 : vector<2x128xf32>
    %cst_7 = arith.constant 0.000000e+00 : f32
    %10 = vector.broadcast %cst_7 : f32 to vector<2x128xf32>
    %11 = arith.maximumf %9, %10 : vector<2x128xf32>
    %12 = arith.truncf %11 : vector<2x128xf32> to vector<2x128xbf16>
    %c0_8 = arith.constant 0 : index
    %c0_9 = arith.constant 0 : index
    %13 = vector.load %arg5[%c0_8, %c0_9] : memref<128x128xbf16, #tpu.memory_space<vmem>>, vector<128x128xbf16>
    %cst_10 = arith.constant dense<0.000000e+00> : vector<2x128xf32>
    %14 = tpu.matmul %12, %13, %cst_10 {dimension_numbers = #tpu.dot_dimension_numbers<[1], [0], [0], [1], [0, 0, 1, 1], [], []>} : vector<2x128xbf16>, vector<128x128xbf16>, vector<2x128xf32> -> vector<2x128xf32>
    %c0_11 = arith.constant 0 : index
    %c0_12 = arith.constant 0 : index
    %15 = vector.load %arg6[%c0_11, %c0_12] : memref<1x128xf32, #tpu.memory_space<vmem>>, vector<1x128xf32>
    %16 = vector.broadcast %15 : vector<1x128xf32> to vector<2x128xf32>
    %17 = arith.mulf %14, %16 : vector<2x128xf32>
    %c0_13 = arith.constant 0 : index
    %c0_14 = arith.constant 0 : index
    %18 = vector.load %arg7[%c0_13, %c0_14] : memref<1x128xf32, #tpu.memory_space<vmem>>, vector<1x128xf32>
    %19 = vector.broadcast %18 : vector<1x128xf32> to vector<2x128xf32>
    %20 = arith.addf %17, %19 : vector<2x128xf32>
    %cst_15 = arith.constant 0.000000e+00 : f32
    %21 = vector.broadcast %cst_15 : f32 to vector<2x128xf32>
    %22 = arith.maximumf %20, %21 : vector<2x128xf32>
    %23 = arith.truncf %22 : vector<2x128xf32> to vector<2x128xbf16>
    %c0_16 = arith.constant 0 : index
    %c0_17 = arith.constant 0 : index
    %24 = vector.load %arg8[%c0_16, %c0_17] : memref<128x128xbf16, #tpu.memory_space<vmem>>, vector<128x128xbf16>
    %cst_18 = arith.constant dense<0.000000e+00> : vector<2x128xf32>
    %25 = tpu.matmul %23, %24, %cst_18 {dimension_numbers = #tpu.dot_dimension_numbers<[1], [0], [0], [1], [0, 0, 1, 1], [], []>} : vector<2x128xbf16>, vector<128x128xbf16>, vector<2x128xf32> -> vector<2x128xf32>
    %c0_19 = arith.constant 0 : index
    %c0_20 = arith.constant 0 : index
    %26 = vector.load %arg9[%c0_19, %c0_20] : memref<1x128xf32, #tpu.memory_space<vmem>>, vector<1x128xf32>
    %27 = vector.broadcast %26 : vector<1x128xf32> to vector<2x128xf32>
    %28 = arith.addf %25, %27 : vector<2x128xf32>
    %29 = arith.truncf %28 : vector<2x128xf32> to vector<2x128xbf16>
    %c0_21 = arith.constant 0 : index
    %c0_22 = arith.constant 0 : index
    %30 = vector.load %arg10[%c0_21, %c0_22] : memref<2x128xbf16, #tpu.memory_space<vmem>>, vector<2x128xbf16>
    tpu.vector_store %arg10[%c0_21, %c0_22], %29 {strides = array<i32>} : memref<2x128xbf16, #tpu.memory_space<vmem>>, vector<2x128xbf16>,
    return
  }
  func.func @transform_0(%arg0: i32) -> (i32, i32) {
    %c0_i32 = arith.constant 0 : i32
    %c0_i32_0 = arith.constant 0 : i32
    return %arg0, %c0_i32 : i32, i32
  }
  func.func @transform_1(%arg0: i32) -> (i32, i32) {
    %c0_i32 = arith.constant 0 : i32
    %c0_i32_0 = arith.constant 0 : i32
    %c0_i32_1 = arith.constant 0 : i32
    return %c0_i32, %c0_i32_0 : i32, i32
  }
  func.func @transform_2(%arg0: i32) -> (i32, i32) {
    %c0_i32 = arith.constant 0 : i32
    %c0_i32_0 = arith.constant 0 : i32
    %c0_i32_1 = arith.constant 0 : i32
    return %c0_i32, %c0_i32_0 : i32, i32
  }
  func.func @transform_3(%arg0: i32) -> (i32, i32) {
    %c0_i32 = arith.constant 0 : i32
    %c0_i32_0 = arith.constant 0 : i32
    %c0_i32_1 = arith.constant 0 : i32
    return %c0_i32, %c0_i32_0 : i32, i32
  }
  func.func @transform_4(%arg0: i32) -> (i32, i32) {
    %c0_i32 = arith.constant 0 : i32
    %c0_i32_0 = arith.constant 0 : i32
    %c0_i32_1 = arith.constant 0 : i32
    return %c0_i32, %c0_i32_0 : i32, i32
  }
  func.func @transform_5(%arg0: i32) -> (i32, i32) {
    %c0_i32 = arith.constant 0 : i32
    %c0_i32_0 = arith.constant 0 : i32
    %c0_i32_1 = arith.constant 0 : i32
    return %c0_i32, %c0_i32_0 : i32, i32
  }
  func.func @transform_6(%arg0: i32) -> (i32, i32) {
    %c0_i32 = arith.constant 0 : i32
    %c0_i32_0 = arith.constant 0 : i32
    %c0_i32_1 = arith.constant 0 : i32
    return %c0_i32, %c0_i32_0 : i32, i32
  }
  func.func @transform_7(%arg0: i32) -> (i32, i32) {
    %c0_i32 = arith.constant 0 : i32
    %c0_i32_0 = arith.constant 0 : i32
    %c0_i32_1 = arith.constant 0 : i32
    return %c0_i32, %c0_i32_0 : i32, i32
  }
  func.func @transform_8(%arg0: i32) -> (i32, i32) {
    %c0_i32 = arith.constant 0 : i32
    %c0_i32_0 = arith.constant 0 : i32
    %c0_i32_1 = arith.constant 0 : i32
    return %c0_i32, %c0_i32_0 : i32, i32
  }
  func.func @transform_9(%arg0: i32) -> (i32, i32) {
    %c0_i32 = arith.constant 0 : i32
    %c0_i32_0 = arith.constant 0 : i32
    return %arg0, %c0_i32 : i32, i32
  }
}

module attributes {stable_mosaic.version = 11 : i64} {
  func.func @_qnet_bn_kernel(%arg0: i32, %arg1: memref<2x8xf32, #tpu.memory_space<vmem>>, %arg2: memref<8x128xbf16, #tpu.memory_space<vmem>>, %arg3: memref<1x128xf32, #tpu.memory_space<vmem>>, %arg4: memref<1x128xf32, #tpu.memory_space<vmem>>, %arg5: memref<128x128xbf16, #tpu.memory_space<vmem>>, %arg6: memref<1x128xf32, #tpu.memory_space<vmem>>, %arg7: memref<1x128xf32, #tpu.memory_space<vmem>>, %arg8: memref<128x128xbf16, #tpu.memory_space<vmem>>, %arg9: memref<1x128xf32, #tpu.memory_space<vmem>>, %arg10: memref<2x128xbf16, #tpu.memory_space<vmem>>) attributes {dimension_semantics = [#tpu.dimension_semantics<parallel>], iteration_bounds = array<i64: 1>, scalar_prefetch = 0 : i64, scratch_operands = 0 : i64, tpu.core_type = #tpu.core_type<tc>, window_params = [{transform_indices = @transform_0, window_bounds = array<i64: 2, 8>}, {pipeline_mode = #tpu.pipeline_mode<synchronous>, transform_indices = @transform_1, window_bounds = array<i64: 8, 128>}, {pipeline_mode = #tpu.pipeline_mode<synchronous>, transform_indices = @transform_2, window_bounds = array<i64: 1, 128>}, {pipeline_mode = #tpu.pipeline_mode<synchronous>, transform_indices = @transform_3, window_bounds = array<i64: 1, 128>}, {pipeline_mode = #tpu.pipeline_mode<synchronous>, transform_indices = @transform_4, window_bounds = array<i64: 128, 128>}, {pipeline_mode = #tpu.pipeline_mode<synchronous>, transform_indices = @transform_5, window_bounds = array<i64: 1, 128>}, {pipeline_mode = #tpu.pipeline_mode<synchronous>, transform_indices = @transform_6, window_bounds = array<i64: 1, 128>}, {pipeline_mode = #tpu.pipeline_mode<synchronous>, transform_indices = @transform_7, window_bounds = array<i64: 128, 128>}, {pipeline_mode = #tpu.pipeline_mode<synchronous>, transform_indices = @transform_8, window_bounds = array<i64: 1, 128>}, {transform_indices = @transform_9, window_bounds = array<i64: 2, 128>}]} {
    %c0 = arith.constant 0 : index
    %c0_0 = arith.constant 0 : index
    %0 = vector.load %arg1[%c0, %c0_0] : memref<2x8xf32, #tpu.memory_space<vmem>>, vector<2x8xf32>
    %1 = arith.truncf %0 : vector<2x8xf32> to vector<2x8xbf16>
    %c0_1 = arith.constant 0 : index
    %c0_2 = arith.constant 0 : index
    %2 = vector.load %arg2[%c0_1, %c0_2] : memref<8x128xbf16, #tpu.memory_space<vmem>>, vector<8x128xbf16>
    %cst = arith.constant dense<0.000000e+00> : vector<2x128xf32>
    %3 = tpu.matmul %1, %2, %cst {dimension_numbers = #tpu.dot_dimension_numbers<[1], [0], [0], [1], [0, 0, 1, 1], [], []>} : vector<2x8xbf16>, vector<8x128xbf16>, vector<2x128xf32> -> vector<2x128xf32>
    %c0_3 = arith.constant 0 : index
    %c0_4 = arith.constant 0 : index
    %4 = vector.load %arg3[%c0_3, %c0_4] : memref<1x128xf32, #tpu.memory_space<vmem>>, vector<1x128xf32>
    %5 = vector.broadcast %4 : vector<1x128xf32> to vector<2x128xf32>
    %6 = arith.mulf %3, %5 : vector<2x128xf32>
    %c0_5 = arith.constant 0 : index
    %c0_6 = arith.constant 0 : index
    %7 = vector.load %arg4[%c0_5, %c0_6] : memref<1x128xf32, #tpu.memory_space<vmem>>, vector<1x128xf32>
    %8 = vector.broadcast %7 : vector<1x128xf32> to vector<2x128xf32>
    %9 = arith.addf %6, %8 : vector<2x128xf32>
    %cst_7 = arith.constant 0.000000e+00 : f32
    %10 = vector.broadcast %cst_7 : f32 to vector<2x128xf32>
    %11 = arith.maximumf %9, %10 : vector<2x128xf32>
    %12 = arith.truncf %11 : vector<2x128xf32> to vector<2x128xbf16>
    %c0_8 = arith.constant 0 : index
    %c0_9 = arith.constant 0 : index
    %13 = vector.load %arg5[%c0_8, %c0_9] : memref<128x128xbf16, #tpu.memory_space<vmem>>, vector<128x128xbf16>
    %cst_10 = arith.constant dense<0.000000e+00> : vector<2x128xf32>
    %14 = tpu.matmul %12, %13, %cst_10 {dimension_numbers = #tpu.dot_dimension_numbers<[1], [0], [0], [1], [0, 0, 1, 1], [], []>} : vector<2x128xbf16>, vector<128x128xbf16>, vector<2x128xf32> -> vector<2x128xf32>
    %c0_11 = arith.constant 0 : index
    %c0_12 = arith.constant 0 : index
    %15 = vector.load %arg6[%c0_11, %c0_12] : memref<1x128xf32, #tpu.memory_space<vmem>>, vector<1x128xf32>
    %16 = vector.broadcast %15 : vector<1x128xf32> to vector<2x128xf32>
    %17 = arith.mulf %14, %16 : vector<2x128xf32>
    %c0_13 = arith.constant 0 : index
    %c0_14 = arith.constant 0 : index
    %18 = vector.load %arg7[%c0_13, %c0_14] : memref<1x128xf32, #tpu.memory_space<vmem>>, vector<1x128xf32>
    %19 = vector.broadcast %18 : vector<1x128xf32> to vector<2x128xf32>
    %20 = arith.addf %17, %19 : vector<2x128xf32>
    %cst_15 = arith.constant 0.000000e+00 : f32
    %21 = vector.broadcast %cst_15 : f32 to vector<2x128xf32>
    %22 = arith.maximumf %20, %21 : vector<2x128xf32>
    %23 = arith.truncf %22 : vector<2x128xf32> to vector<2x128xbf16>
    %c0_16 = arith.constant 0 : index
    %c0_17 = arith.constant 0 : index
    %24 = vector.load %arg8[%c0_16, %c0_17] : memref<128x128xbf16, #tpu.memory_space<vmem>>, vector<128x128xbf16>
    %cst_18 = arith.constant dense<0.000000e+00> : vector<2x128xf32>
    %25 = tpu.matmul %23, %24, %cst_18 {dimension_numbers = #tpu.dot_dimension_numbers<[1], [0], [0], [1], [0, 0, 1, 1], [], []>} : vector<2x128xbf16>, vector<128x128xbf16>, vector<2x128xf32> -> vector<2x128xf32>
    %c0_19 = arith.constant 0 : index
    %c0_20 = arith.constant 0 : index
    %26 = vector.load %arg9[%c0_19, %c0_20] : memref<1x128xf32, #tpu.memory_space<vmem>>, vector<1x128xf32>
    %27 = vector.broadcast %26 : vector<1x128xf32> to vector<2x128xf32>
    %28 = arith.addf %25, %27 : vector<2x128xf32>
    %29 = arith.truncf %28 : vector<2x128xf32> to vector<2x128xbf16>
    %c0_21 = arith.constant 0 : index
    %c0_22 = arith.constant 0 : index
    %30 = vector.load %arg10[%c0_21, %c0_22] : memref<2x128xbf16, #tpu.memory_space<vmem>>, vector<2x128xbf16>
    tpu.vector_store %arg10[%c0_21, %c0_22], %29 {strides = array<i32>} : memref<2x128xbf16, #tpu.memory_space<vmem>>, vector<2x128xbf16>,
    return
  }
  func.func @transform_0(%arg0: i32) -> (i32, i32) {
    %c0_i32 = arith.constant 0 : i32
    %c0_i32_0 = arith.constant 0 : i32
    return %arg0, %c0_i32 : i32, i32
  }
  func.func @transform_1(%arg0: i32) -> (i32, i32) {
    %c0_i32 = arith.constant 0 : i32
    %c0_i32_0 = arith.constant 0 : i32
    %c0_i32_1 = arith.constant 0 : i32
    return %c0_i32, %c0_i32_0 : i32, i32
  }
  func.func @transform_2(%arg0: i32) -> (i32, i32) {
    %c0_i32 = arith.constant 0 : i32
    %c0_i32_0 = arith.constant 0 : i32
    %c0_i32_1 = arith.constant 0 : i32
    return %c0_i32, %c0_i32_0 : i32, i32
  }
  func.func @transform_3(%arg0: i32) -> (i32, i32) {
    %c0_i32 = arith.constant 0 : i32
    %c0_i32_0 = arith.constant 0 : i32
    %c0_i32_1 = arith.constant 0 : i32
    return %c0_i32, %c0_i32_0 : i32, i32
  }
  func.func @transform_4(%arg0: i32) -> (i32, i32) {
    %c0_i32 = arith.constant 0 : i32
    %c0_i32_0 = arith.constant 0 : i32
    %c0_i32_1 = arith.constant 0 : i32
    return %c0_i32, %c0_i32_0 : i32, i32
  }
  func.func @transform_5(%arg0: i32) -> (i32, i32) {
    %c0_i32 = arith.constant 0 : i32
    %c0_i32_0 = arith.constant 0 : i32
    %c0_i32_1 = arith.constant 0 : i32
    return %c0_i32, %c0_i32_0 : i32, i32
  }
  func.func @transform_6(%arg0: i32) -> (i32, i32) {
    %c0_i32 = arith.constant 0 : i32
    %c0_i32_0 = arith.constant 0 : i32
    %c0_i32_1 = arith.constant 0 : i32
    return %c0_i32, %c0_i32_0 : i32, i32
  }
  func.func @transform_7(%arg0: i32) -> (i32, i32) {
    %c0_i32 = arith.constant 0 : i32
    %c0_i32_0 = arith.constant 0 : i32
    %c0_i32_1 = arith.constant 0 : i32
    return %c0_i32, %c0_i32_0 : i32, i32
  }
  func.func @transform_8(%arg0: i32) -> (i32, i32) {
    %c0_i32 = arith.constant 0 : i32
    %c0_i32_0 = arith.constant 0 : i32
    %c0_i32_1 = arith.constant 0 : i32
    return %c0_i32, %c0_i32_0 : i32, i32
  }
  func.func @transform_9(%arg0: i32) -> (i32, i32) {
    %c0_i32 = arith.constant 0 : i32
    %c0_i32_0 = arith.constant 0 : i32
    return %arg0, %c0_i32 : i32, i32
  }
}

</mosaic_0001>

<bundles_post_ra>
// kernel: qnetwork_batchnorm_forward.1
= control target key start
LH: loop header
LB: loop body
LE: loop exit
PB: predicated region body
PF: predicated region fallthrough
CT: control target
= control target key end

     0   :  { %vm40_vm0 = vcmask 1043456   ;;  %vm36_vm1 = vcmask 64512   ;;  %s453_s1 = inlined_call_operand.vmem [shape: bf16[8,128], index: 1, kind: input, shape index: {}]   ;;  %s454_s0 = inlined_call_operand.vmem [shape: f32[2,8], index: 0, kind: input, shape index: {}]   ;;  %s455_s4 = inlined_call_operand.vmem [shape: bf16[128,128], index: 4, kind: input, shape index: {}]   ;;  %s456_s2 = inlined_call_operand.vmem [shape: f32[1,128], index: 2, kind: input, shape index: {}]   ;;  %s457_s3 = inlined_call_operand.vmem [shape: f32[1,128], index: 3, kind: input, shape index: {}]   ;;  %s458_s5 = inlined_call_operand.vmem [shape: f32[1,128], index: 5, kind: input, shape index: {}]   ;;  %s459_s7 = inlined_call_operand.vmem [shape: bf16[128,128], index: 7, kind: input, shape index: {}]   ;;  %s460_s6 = inlined_call_operand.vmem [shape: f32[1,128], index: 6, kind: input, shape index: {}]   ;;  %s461_s8 = inlined_call_operand.vmem [shape: f32[1,128], index: 8, kind: input, shape index: {}]   ;;  %s462_s9 = inlined_call_operand.vmem [shape: bf16[2,128], index: 9, kind: output, shape index: {}]  }
   0x1   :  { %v35_v0 = vld [vmem:[%s453_s1] sm:$0xf]  ;;  %v317_v2 = vld [vmem:[%s455_s4 + $0x38] sm:$0xff]  ;;  %v316_v5 = vld [vmem:[%s455_s4 + $0x30] sm:$0xff] }
   0x2   :  { %v33_v1 = vld [vmem:[%s454_s0] sm:$0x3]  ;;  %v42_v3 = vsel %vm40_vm0, %v35_v0, 0  ;;  %133 = vmatpush.bf16.msra.mxu1 %v317_v2  ;;  %v315_v6 = vld [vmem:[%s455_s4 + $0x28] sm:$0xff]  ;;  %v313_v8 = vld [vmem:[%s455_s4 + $0x18] sm:$0xff] }
   0x3   :  { %v34_v4 = vpack.c.bf16 %v33_v1, %v33_v1  ;;  %51 = vmatpush.bf16.msra.mxu0 %v42_v3  ;;  %v314_v7 = vld [vmem:[%s455_s4 + $0x20] sm:$0xff]  ;;  %v312_v9 = vld [vmem:[%s455_s4 + $0x10] sm:$0xff]  ;;  %v311_v10 = vld [vmem:[%s455_s4 + $0x8] sm:$0xff] }
   0x4   :  { %v310_v11 = vld [vmem:[%s455_s4] sm:$0xff]  ;;  %v325_v12 = vld [vmem:[%s459_s7 + $0x38] sm:$0xff]  ;;  %v324_v13 = vld [vmem:[%s459_s7 + $0x30] sm:$0xff] }
   0x5   :  { %226 = vmatpush.bf16.msra.mxu2 %v325_v12  ;;  %v323_v14 = vld [vmem:[%s459_s7 + $0x28] sm:$0xff]  ;;  %v322_v15 = vld [vmem:[%s459_s7 + $0x20] sm:$0xff]  ;;  %v321_v16 = vld [vmem:[%s459_s7 + $0x18] sm:$0xff] }
   0x6   :  { %245 = vmatmul.msk.bf16.vlgmr.msra.gmra.mxu0 %vm36_vm1, %v34_v4  ;;  %134 = vmatpush.bf16.msra.mxu1 %v316_v5  ;;  %v320_v17 = vld [vmem:[%s459_s7 + $0x10] sm:$0xff]  ;;  %v326_v18 = vld [vmem:[%s456_s2] ss:$0 sm:$0xff]  ;;  %v319_v26 = vld [vmem:[%s459_s7 + $0x8] sm:$0xff] }
   0x7   :  { %v327_v19 = vld [vmem:[%s457_s3] ss:$0 sm:$0xff] }
   0x8   :  { %v318_v27 = vld [vmem:[%s459_s7] sm:$0xff] }
   0x9   :  { %227 = vmatpush.bf16.msra.mxu2 %v324_v13  ;;  %v328_v28 = vld [vmem:[%s458_s5] ss:$0 sm:$0xff] }
   0xa   :  { %135 = vmatpush.bf16.msra.mxu1 %v315_v6  ;;  %v329_v29 = vld [vmem:[%s460_s6] ss:$0 sm:$0xff] }
   0xb   :  { %v330_v36 = vld [vmem:[%s461_s8] ss:$0 sm:$0xff] }
   0xd   :  { %228 = vmatpush.bf16.msra.mxu2 %v323_v14 }
   0xe   :  { %136 = vmatpush.bf16.msra.mxu1 %v314_v7 }
  0x11   :  { %229 = vmatpush.bf16.msra.mxu2 %v322_v15 }
  0x12   :  { %137 = vmatpush.bf16.msra.mxu1 %v313_v8 }
  0x15   :  { %230 = vmatpush.bf16.msra.mxu2 %v321_v16 }
  0x16   :  { %138 = vmatpush.bf16.msra.mxu1 %v312_v9 }
  0x19   :  { %231 = vmatpush.bf16.msra.mxu2 %v320_v17 }
  0x1a   :  { %139 = vmatpush.bf16.msra.mxu1 %v311_v10 }
  0x1d   :  { %232 = vmatpush.bf16.msra.mxu2 %v319_v26 }
  0x1e   :  { %140 = vmatpush.bf16.msra.mxu1 %v310_v11 }
  0x21   :  { %233 = vmatpush.bf16.msra.mxu2 %v318_v27 }
  0x83   :  { %v53_v20 = vpop.f32.mrf.mxu0 }
  0x84   :  { %v61_v21 = vmul.f32 %v326_v18, %v53_v20 }
  0x86   :  { %v66_v22 = vadd.f32 %v327_v19, %v61_v21 }
  0x88   :  { %v67_v23 = vmax.f32 %v66_v22, 0.0 }
  0x8a   :  { %v68_v24 = vpack.c.bf16 %v67_v23, %v67_v23 }
  0x8b   :  { %v55_v25 = vpop.f32.mrf.mxu0 }
  0x8c   :  { %141 = vmatmul.bf16.vlgmr.msra.gmra.mxu1 %v68_v24 }
 0x109   :  { %v142_v30 = vpop.f32.mrf.mxu1 }
 0x10a   :  { %v150_v31 = vmul.f32 %v328_v28, %v142_v30 }
 0x10c   :  { %v155_v32 = vadd.f32 %v329_v29, %v150_v31 }
 0x10e   :  { %v156_v33 = vmax.f32 %v155_v32, 0.0 }
 0x110   :  { %v157_v34 = vpack.c.bf16 %v156_v33, %v156_v33 }
 0x111   :  { %v144_v35 = vpop.f32.mrf.mxu1 }
 0x112   :  { %234 = vmatmul.bf16.vlgmr.msra.gmra.mxu2 %v157_v34 }
 0x195   :  { %v235_v37 = vpop.f32.mrf.mxu2 }
 0x196   :  { %v236_v38 = vadd.f32 %v330_v36, %v235_v37 }
 0x198   :  { %v239_v39 = vpack.c.bf16 %v236_v38, %v236_v38 }
 0x19a   :  { %240 = vst [vmem:[%s462_s9] sm:$0x1] %v239_v39 }
 0x19d   :  { %v237_v40 = vpop.f32.mrf.mxu2 }

// kernel: qnetwork_batchnorm_forward.1
= control target key start
LH: loop header
LB: loop body
LE: loop exit
PB: predicated region body
PF: predicated region fallthrough
CT: control target
= control target key end

     0   :  { %vm40_vm0 = vcmask 1043456   ;;  %vm36_vm1 = vcmask 64512   ;;  %s453_s1 = inlined_call_operand.vmem [shape: bf16[8,128], index: 1, kind: input, shape index: {}]   ;;  %s454_s0 = inlined_call_operand.vmem [shape: f32[2,8], index: 0, kind: input, shape index: {}]   ;;  %s455_s4 = inlined_call_operand.vmem [shape: bf16[128,128], index: 4, kind: input, shape index: {}]   ;;  %s456_s2 = inlined_call_operand.vmem [shape: f32[1,128], index: 2, kind: input, shape index: {}]   ;;  %s457_s3 = inlined_call_operand.vmem [shape: f32[1,128], index: 3, kind: input, shape index: {}]   ;;  %s458_s5 = inlined_call_operand.vmem [shape: f32[1,128], index: 5, kind: input, shape index: {}]   ;;  %s459_s7 = inlined_call_operand.vmem [shape: bf16[128,128], index: 7, kind: input, shape index: {}]   ;;  %s460_s6 = inlined_call_operand.vmem [shape: f32[1,128], index: 6, kind: input, shape index: {}]   ;;  %s461_s8 = inlined_call_operand.vmem [shape: f32[1,128], index: 8, kind: input, shape index: {}]   ;;  %s462_s9 = inlined_call_operand.vmem [shape: bf16[2,128], index: 9, kind: output, shape index: {}]  }
   0x1   :  { %v35_v0 = vld [vmem:[%s453_s1] sm:$0xf]  ;;  %v317_v2 = vld [vmem:[%s455_s4 + $0x38] sm:$0xff]  ;;  %v316_v5 = vld [vmem:[%s455_s4 + $0x30] sm:$0xff] }
   0x2   :  { %v33_v1 = vld [vmem:[%s454_s0] sm:$0x3]  ;;  %v42_v3 = vsel %vm40_vm0, %v35_v0, 0  ;;  %133 = vmatpush.bf16.msra.mxu1 %v317_v2  ;;  %v315_v6 = vld [vmem:[%s455_s4 + $0x28] sm:$0xff]  ;;  %v313_v8 = vld [vmem:[%s455_s4 + $0x18] sm:$0xff] }
   0x3   :  { %v34_v4 = vpack.c.bf16 %v33_v1, %v33_v1  ;;  %51 = vmatpush.bf16.msra.mxu0 %v42_v3  ;;  %v314_v7 = vld [vmem:[%s455_s4 + $0x20] sm:$0xff]  ;;  %v312_v9 = vld [vmem:[%s455_s4 + $0x10] sm:$0xff]  ;;  %v311_v10 = vld [vmem:[%s455_s4 + $0x8] sm:$0xff] }
   0x4   :  { %v310_v11 = vld [vmem:[%s455_s4] sm:$0xff]  ;;  %v325_v12 = vld [vmem:[%s459_s7 + $0x38] sm:$0xff]  ;;  %v324_v13 = vld [vmem:[%s459_s7 + $0x30] sm:$0xff] }
   0x5   :  { %226 = vmatpush.bf16.msra.mxu2 %v325_v12  ;;  %v323_v14 = vld [vmem:[%s459_s7 + $0x28] sm:$0xff]  ;;  %v322_v15 = vld [vmem:[%s459_s7 + $0x20] sm:$0xff]  ;;  %v321_v16 = vld [vmem:[%s459_s7 + $0x18] sm:$0xff] }
   0x6   :  { %245 = vmatmul.msk.bf16.vlgmr.msra.gmra.mxu0 %vm36_vm1, %v34_v4  ;;  %134 = vmatpush.bf16.msra.mxu1 %v316_v5  ;;  %v320_v17 = vld [vmem:[%s459_s7 + $0x10] sm:$0xff]  ;;  %v326_v18 = vld [vmem:[%s456_s2] ss:$0 sm:$0xff]  ;;  %v319_v26 = vld [vmem:[%s459_s7 + $0x8] sm:$0xff] }
   0x7   :  { %v327_v19 = vld [vmem:[%s457_s3] ss:$0 sm:$0xff] }
   0x8   :  { %v318_v27 = vld [vmem:[%s459_s7] sm:$0xff] }
   0x9   :  { %227 = vmatpush.bf16.msra.mxu2 %v324_v13  ;;  %v328_v28 = vld [vmem:[%s458_s5] ss:$0 sm:$0xff] }
   0xa   :  { %135 = vmatpush.bf16.msra.mxu1 %v315_v6  ;;  %v329_v29 = vld [vmem:[%s460_s6] ss:$0 sm:$0xff] }
   0xb   :  { %v330_v36 = vld [vmem:[%s461_s8] ss:$0 sm:$0xff] }
   0xd   :  { %228 = vmatpush.bf16.msra.mxu2 %v323_v14 }
   0xe   :  { %136 = vmatpush.bf16.msra.mxu1 %v314_v7 }
  0x11   :  { %229 = vmatpush.bf16.msra.mxu2 %v322_v15 }
  0x12   :  { %137 = vmatpush.bf16.msra.mxu1 %v313_v8 }
  0x15   :  { %230 = vmatpush.bf16.msra.mxu2 %v321_v16 }
  0x16   :  { %138 = vmatpush.bf16.msra.mxu1 %v312_v9 }
  0x19   :  { %231 = vmatpush.bf16.msra.mxu2 %v320_v17 }
  0x1a   :  { %139 = vmatpush.bf16.msra.mxu1 %v311_v10 }
  0x1d   :  { %232 = vmatpush.bf16.msra.mxu2 %v319_v26 }
  0x1e   :  { %140 = vmatpush.bf16.msra.mxu1 %v310_v11 }
  0x21   :  { %233 = vmatpush.bf16.msra.mxu2 %v318_v27 }
  0x83   :  { %v53_v20 = vpop.f32.mrf.mxu0 }
  0x84   :  { %v61_v21 = vmul.f32 %v326_v18, %v53_v20 }
  0x86   :  { %v66_v22 = vadd.f32 %v327_v19, %v61_v21 }
  0x88   :  { %v67_v23 = vmax.f32 %v66_v22, 0.0 }
  0x8a   :  { %v68_v24 = vpack.c.bf16 %v67_v23, %v67_v23 }
  0x8b   :  { %v55_v25 = vpop.f32.mrf.mxu0 }
  0x8c   :  { %141 = vmatmul.bf16.vlgmr.msra.gmra.mxu1 %v68_v24 }
 0x109   :  { %v142_v30 = vpop.f32.mrf.mxu1 }
 0x10a   :  { %v150_v31 = vmul.f32 %v328_v28, %v142_v30 }
 0x10c   :  { %v155_v32 = vadd.f32 %v329_v29, %v150_v31 }
 0x10e   :  { %v156_v33 = vmax.f32 %v155_v32, 0.0 }
 0x110   :  { %v157_v34 = vpack.c.bf16 %v156_v33, %v156_v33 }
 0x111   :  { %v144_v35 = vpop.f32.mrf.mxu1 }
 0x112   :  { %234 = vmatmul.bf16.vlgmr.msra.gmra.mxu2 %v157_v34 }
 0x195   :  { %v235_v37 = vpop.f32.mrf.mxu2 }
 0x196   :  { %v236_v38 = vadd.f32 %v330_v36, %v235_v37 }
 0x198   :  { %v239_v39 = vpack.c.bf16 %v236_v38, %v236_v38 }
 0x19a   :  { %240 = vst [vmem:[%s462_s9] sm:$0x1] %v239_v39 }
 0x19d   :  { %v237_v40 = vpop.f32.mrf.mxu2 }

</bundles_post_ra>
